<compile_context>
chip_gen: v6e
topology: v6e:2x2x1
jax: 0.10.0
libtpu: 0.0.40
codegen_flags: <defaults>
</compile_context>

<pallas_src>
import functools

import numpy as np
import jax
import jax.numpy as jnp
from jax import lax
from jax.experimental import pallas as pl
from jax.experimental.pallas import tpu as pltpu


def _sublane_pad(c):
    return ((c + 7) // 8) * 8


# ----------------------------------------------------------------------------
# Kernel 1: per-channel batch-norm partial sums (lane-dense: HW on lanes).
# Each grid step reduces its own batch block and writes its own output row, so
# the grid axis is "parallel" (megacore friendly).  The tiny cross-block
# combine happens in XLA.
# ----------------------------------------------------------------------------
def _bn_stats_kernel(x_ref, sum_ref, ssq_ref):
    nb, c, _ = x_ref.shape
    s = jnp.zeros((c, 1), jnp.float32)
    ss = jnp.zeros((c, 1), jnp.float32)
    for n in range(nb):
        xi = x_ref[n]                                    # (C, HW), lane-dense
        s = s + jnp.sum(xi, axis=1, keepdims=True)
        ss = ss + jnp.sum(xi * xi, axis=1, keepdims=True)
    sum_ref[0] = s
    ssq_ref[0] = ss


# ----------------------------------------------------------------------------
# Kernel 2: fused SPADE body (normalize + conv1 + conv2(gamma|beta) + affine).
# One grid step processes a block of `nb` images; all tensors are (rows, HW)
# with HW on the lane axis.
# ----------------------------------------------------------------------------
def _spade_kernel(mean_ref, invstd_ref, x_ref, m_ref,
                  w1_ref, b1_ref, wgb_ref, bgb_ref,
                  out_ref, patches_ref, *, H, W, alpha):
    nb, C, HW = x_ref.shape
    Cmp = m_ref.shape[1]          # modulation channels padded to a sublane tile
    C2 = 2 * C

    # SAME-padding boundary masks / lane shifts for the 9 taps of a 3x3 conv on
    # the flattened row-major H*W axis (shared by both convolutions).
    pos = lax.broadcasted_iota(jnp.int32, (1, HW), 1)
    hh = pos // W
    ww = pos % W
    shifts, masks = [], []
    for dy in (-1, 0, 1):
        for dx in (-1, 0, 1):
            shifts.append((-(dy * W + dx)) % HW)
            masks.append((hh + dy >= 0) & (hh + dy < H) &
                         (ww + dx >= 0) & (ww + dx < W))

    mean = mean_ref[...]          # (C, 1)
    invstd = invstd_ref[...]      # (C, 1)
    w1 = w1_ref[...]              # (Ch, 9*Cmp)   im2col weight
    b1 = b1_ref[...]              # (Ch, 1)
    wgb = wgb_ref[...]            # (9*2C, Ch)    [gamma | beta] stacked per tap
    bgb = bgb_ref[...]            # (2C, 1)

    for n in range(nb):
        # ---- conv1: im2col into a tile-aligned VMEM scratch, one matmul ----
        mod = m_ref[n]                                   # (Cmp, HW)
        for k in range(9):
            tap = mod
            if shifts[k]:                                # center tap needs no shift/mask
                tap = pltpu.roll(tap, shift=shifts[k], axis=1)
                tap = jnp.where(masks[k], tap, 0.0)
            patches_ref[k * Cmp:(k + 1) * Cmp, :] = tap.astype(patches_ref.dtype)
        hidden = jnp.dot(w1, patches_ref[...],
                         preferred_element_type=jnp.float32)     # (Ch, HW)
        hidden = jnp.maximum(hidden + b1, 0.0)

        # ---- conv2 ("shift after matmul"): gamma and beta in one matmul ----
        t = jnp.dot(wgb, hidden.astype(wgb.dtype),
                    preferred_element_type=jnp.float32)          # (9*2C, HW)
        so = jnp.zeros((C2, HW), jnp.float32)
        for k in range(9):
            tk = t[k * C2:(k + 1) * C2, :]                       # (2C, HW)
            if shifts[k]:
                tk = pltpu.roll(tk, shift=shifts[k], axis=1)
                tk = jnp.where(masks[k], tk, 0.0)
            so = so + tk
        so = so + bgb
        scale = so[:C, :]
        offset = so[C:, :]

        # ---- batch-norm normalize + SPADE affine (+ optional alpha blend) ----
        x = x_ref[n]                                     # (C, HW)
        out = (x - mean) * invstd * scale + offset
        if alpha != 1.0:
            out = alpha * out + (1.0 - alpha) * x
        out_ref[n] = out.astype(out_ref.dtype)


# ----------------------------------------------------------------------------
# Wrapper (layout glue: flatten NCHW, pad modulation channels, reshape weights,
# finalize BN statistics).
# ----------------------------------------------------------------------------
def spatial_adaptive_norm(x_nchw, m_nchw, params, *, eps=1e-8, alpha=1.0,
                          batch_block=None, conv_dtype=jnp.float32):
    N, C, H, W = x_nchw.shape
    Cm = m_nchw.shape[1]
    HW = H * W
    Ch = params["w1"].shape[-1]
    Cmp = _sublane_pad(Cm)

    # Native NCHW, spatially flattened (free reshape): HW goes on the lane axis.
    x = x_nchw.reshape(N, C, HW).astype(jnp.float32)
    m = m_nchw.reshape(N, Cm, HW).astype(jnp.float32)
    if Cmp != Cm:
        m = jnp.pad(m, ((0, 0), (0, Cmp - Cm), (0, 0)))

    # Several images per grid step (amortizes per-step overhead at small H*W).
    if batch_block is None:
        batch_block = max(1, min(N, (1 << 20) // max(1, 4 * (2 * C + Cmp) * HW)))
    nb = max(1, min(N, batch_block))
    while N % nb:
        nb -= 1
    G = N // nb

    cparams = pltpu.CompilerParams(
        dimension_semantics=("parallel",),
        vmem_limit_bytes=32 * 1024 * 1024)

    # ---- pass 1: batch-norm statistics (per-block partial sums) ----
    psum, pssq = pl.pallas_call(
        _bn_stats_kernel,
        out_shape=(jax.ShapeDtypeStruct((G, C, 1), jnp.float32),
                   jax.ShapeDtypeStruct((G, C, 1), jnp.float32)),
        grid=(G,),
        in_specs=[pl.BlockSpec((nb, C, HW), lambda i: (i, 0, 0))],
        out_specs=(pl.BlockSpec((1, C, 1), lambda i: (i, 0, 0)),
                   pl.BlockSpec((1, C, 1), lambda i: (i, 0, 0))),
        compiler_params=cparams,
    )(x)
    count = float(N * HW)
    mean = jnp.sum(psum, axis=0) / count                         # (C, 1)
    # NOTE: E[x^2]-mean^2 can cancel for inputs with |mean| >> std; clamp so
    # rsqrt stays finite.  (A centered second pass would be exact.)
    var = jnp.maximum(jnp.sum(pssq, axis=0) / count - mean * mean, 0.0)
    invstd = lax.rsqrt(var + eps)

    # ---- weight prep (pure layout glue, done once in XLA) ----
    # conv1: HWIO (3,3,Cm,Ch) -> (Ch, 9*Cmp), each tap padded to 8 sublanes so
    # the in-kernel im2col scratch only sees tile-aligned full-row stores.
    w1 = params["w1"].reshape(9, Cm, Ch)
    w1 = jnp.pad(w1, ((0, 0), (0, Cmp - Cm), (0, 0))).reshape(9 * Cmp, Ch)
    w1 = jnp.transpose(w1).astype(conv_dtype)                    # (Ch, 9*Cmp)
    b1 = params["b1"].reshape(Ch, 1).astype(jnp.float32)

    # conv2: gamma/beta fused into one stacked weight (9*2C, Ch) so a single
    # matmul produces all 9 taps of [gamma | beta] at once.
    wgT = jnp.transpose(params["wg"].reshape(9, Ch, C), (0, 2, 1))  # (9, C, Ch)
    wbT = jnp.transpose(params["wb"].reshape(9, Ch, C), (0, 2, 1))
    wgb = jnp.concatenate([wgT, wbT], axis=1).reshape(9 * 2 * C, Ch)
    wgb = wgb.astype(conv_dtype)
    bgb = jnp.concatenate([params["bg"], params["bb"]]).reshape(2 * C, 1)
    bgb = bgb.astype(jnp.float32)

    kernel = functools.partial(_spade_kernel, H=H, W=W, alpha=float(alpha))
    out = pl.pallas_call(
        kernel,
        out_shape=jax.ShapeDtypeStruct((N, C, HW), jnp.float32),
        grid=(G,),
        in_specs=[
            pl.BlockSpec((C, 1), lambda i: (0, 0)),               # mean
            pl.BlockSpec((C, 1), lambda i: (0, 0)),               # invstd
            pl.BlockSpec((nb, C, HW), lambda i: (i, 0, 0)),       # x
            pl.BlockSpec((nb, Cmp, HW), lambda i: (i, 0, 0)),     # modulation (padded)
            pl.BlockSpec((Ch, 9 * Cmp), lambda i: (0, 0)),        # w1 (im2col)
            pl.BlockSpec((Ch, 1), lambda i: (0, 0)),              # b1
            pl.BlockSpec((9 * 2 * C, Ch), lambda i: (0, 0)),      # [wg|wb] stacked
            pl.BlockSpec((2 * C, 1), lambda i: (0, 0)),           # [bg|bb]
        ],
        out_specs=pl.BlockSpec((nb, C, HW), lambda i: (i, 0, 0)),
        scratch_shapes=[pltpu.VMEM((9 * Cmp, HW), conv_dtype)],   # im2col patches
        compiler_params=cparams,
    )(mean, invstd, x, m, w1, b1, wgb, bgb)

    # TODO(synk): for large H*W add a spatial grid axis with a 1-row halo on the
    # modulation / hidden taps so VMEM stays bounded on 64 MiB parts (v7x).
    return out.reshape(N, C, H, W)


# ----------------------------------------------------------------------------
# Pure-JAX reference (for correctness check), native NCHW.
# ----------------------------------------------------------------------------
def reference_nchw(x, m, params, eps, alpha):
    xf = x.astype(jnp.float32)
    mf = m.astype(jnp.float32)
    mean = jnp.mean(xf, axis=(0, 2, 3), keepdims=True)
    var = jnp.mean(jnp.square(xf - mean), axis=(0, 2, 3), keepdims=True)
    xn = (xf - mean) * lax.rsqrt(var + eps)

    def conv(inp, w, b):
        o = lax.conv_general_dilated(
            inp, w, window_strides=(1, 1), padding="SAME",
            dimension_numbers=("NCHW", "HWIO", "NCHW"))
        return o + b.reshape(1, -1, 1, 1)

    h = jax.nn.relu(conv(mf, params["w1"], params["b1"]))
    scale = conv(h, params["wg"], params["bg"])
    offset = conv(h, params["wb"], params["bb"])
    out = xn * scale + offset
    if alpha != 1.0:
        out = alpha * out + (1.0 - alpha) * xf
    return out


# ----------------------------------------------------------------------------
# Deterministic parameter init (kaiming_uniform weights, zero biases; HWIO).
# ----------------------------------------------------------------------------
def init_params(key, c_in, c_mod, hidden=128, ksize=3):
    k1, k2, k3 = jax.random.split(key, 3)

    def kaiming_uniform(k, shape):
        fan_in = shape[0] * shape[1] * shape[2]
        bound = float(np.sqrt(6.0 / fan_in))
        return jax.random.uniform(k, shape, jnp.float32, -bound, bound)

    return dict(
        w1=kaiming_uniform(k1, (ksize, ksize, c_mod, hidden)),
        b1=jnp.zeros((hidden,), jnp.float32),
        wg=kaiming_uniform(k2, (ksize, ksize, hidden, c_in)),
        bg=jnp.zeros((c_in,), jnp.float32),
        wb=kaiming_uniform(k3, (ksize, ksize, hidden, c_in)),
        bb=jnp.zeros((c_in,), jnp.float32),
    )


if __name__ == "__main__":
    key = jax.random.PRNGKey(0)
    kx, km, kp = jax.random.split(key, 3)

    N, C_in, H, W = 2, 4, 16, 16       # input feature map (PyTorch NCHW)
    C_mod = 3                          # modulation / segmentation-map channels
    hidden = 128                       # SPADE default out_channels

    x = jax.random.normal(kx, (N, C_in, H, W), jnp.float32)
    mod = jax.random.normal(km, (N, C_mod, H, W), jnp.float32)
    params = init_params(kp, C_in, C_mod, hidden=hidden, ksize=3)

    out = spatial_adaptive_norm(x, mod, params, eps=1e-8, alpha=1.0)
    out = jax.block_until_ready(out)

    ref = reference_nchw(x, mod, params, 1e-8, 1.0)
    np.testing.assert_allclose(np.asarray(out), np.asarray(ref),
                               atol=5e-2, rtol=5e-2)
    print("KERNEL_OK")
</pallas_src>

<mosaic_0001>
module attributes {stable_mosaic.version = 11 : i64} {
  func.func @_bn_stats_kernel(%arg0: i32, %arg1: memref<2x4x256xf32, #tpu.memory_space<vmem>>, %arg2: memref<1x4x1xf32, #tpu.memory_space<vmem>>, %arg3: memref<1x4x1xf32, #tpu.memory_space<vmem>>) attributes {dimension_semantics = [#tpu.dimension_semantics<parallel>], iteration_bounds = array<i64: 1>, scalar_prefetch = 0 : i64, scratch_operands = 0 : i64, tpu.core_type = #tpu.core_type<tc>, window_params = [{transform_indices = @transform_0, window_bounds = array<i64: 2, 4, 256>}, {transform_indices = @transform_1, window_bounds = array<i64: 1, 4, 1>}, {transform_indices = @transform_2, window_bounds = array<i64: 1, 4, 1>}]} {
    %cst = arith.constant 0.000000e+00 : f32
    %0 = vector.broadcast %cst : f32 to vector<4x1xf32>
    %cst_0 = arith.constant 0.000000e+00 : f32
    %1 = vector.broadcast %cst_0 : f32 to vector<4x1xf32>
    %c0 = arith.constant 0 : index
    %c0_1 = arith.constant 0 : index
    %c0_2 = arith.constant 0 : index
    %2 = vector.load %arg1[%c0, %c0_1, %c0_2] : memref<2x4x256xf32, #tpu.memory_space<vmem>>, vector<1x4x256xf32>
    %3 = vector.shape_cast %2 : vector<1x4x256xf32> to vector<4x256xf32>
    %cst_3 = arith.constant dense<0.000000e+00> : vector<4xf32>
    %4 = vector.multi_reduction <add>, %3, %cst_3 [1] : vector<4x256xf32> to vector<4xf32>
    %5 = vector.shape_cast %4 : vector<4xf32> to vector<4x1xf32>
    %6 = arith.addf %0, %5 : vector<4x1xf32>
    %7 = arith.mulf %3, %3 : vector<4x256xf32>
    %cst_4 = arith.constant dense<0.000000e+00> : vector<4xf32>
    %8 = vector.multi_reduction <add>, %7, %cst_4 [1] : vector<4x256xf32> to vector<4xf32>
    %9 = vector.shape_cast %8 : vector<4xf32> to vector<4x1xf32>
    %10 = arith.addf %1, %9 : vector<4x1xf32>
    %c1 = arith.constant 1 : index
    %c0_5 = arith.constant 0 : index
    %c0_6 = arith.constant 0 : index
    %11 = vector.load %arg1[%c1, %c0_5, %c0_6] : memref<2x4x256xf32, #tpu.memory_space<vmem>>, vector<1x4x256xf32>
    %12 = vector.shape_cast %11 : vector<1x4x256xf32> to vector<4x256xf32>
    %cst_7 = arith.constant dense<0.000000e+00> : vector<4xf32>
    %13 = vector.multi_reduction <add>, %12, %cst_7 [1] : vector<4x256xf32> to vector<4xf32>
    %14 = vector.shape_cast %13 : vector<4xf32> to vector<4x1xf32>
    %15 = arith.addf %6, %14 : vector<4x1xf32>
    %16 = arith.mulf %12, %12 : vector<4x256xf32>
    %cst_8 = arith.constant dense<0.000000e+00> : vector<4xf32>
    %17 = vector.multi_reduction <add>, %16, %cst_8 [1] : vector<4x256xf32> to vector<4xf32>
    %18 = vector.shape_cast %17 : vector<4xf32> to vector<4x1xf32>
    %19 = arith.addf %10, %18 : vector<4x1xf32>
    %c0_9 = arith.constant 0 : index
    %c0_10 = arith.constant 0 : index
    %c0_11 = arith.constant 0 : index
    %20 = vector.load %arg2[%c0_9, %c0_10, %c0_11] : memref<1x4x1xf32, #tpu.memory_space<vmem>>, vector<1x4x1xf32>
    %21 = vector.shape_cast %20 : vector<1x4x1xf32> to vector<4x1xf32>
    %22 = vector.shape_cast %15 : vector<4x1xf32> to vector<1x4x1xf32>
    tpu.vector_store %arg2[%c0_9, %c0_10, %c0_11], %22 {strides = array<i32>} : memref<1x4x1xf32, #tpu.memory_space<vmem>>, vector<1x4x1xf32>,
    %c0_12 = arith.constant 0 : index
    %c0_13 = arith.constant 0 : index
    %c0_14 = arith.constant 0 : index
    %23 = vector.load %arg3[%c0_12, %c0_13, %c0_14] : memref<1x4x1xf32, #tpu.memory_space<vmem>>, vector<1x4x1xf32>
    %24 = vector.shape_cast %23 : vector<1x4x1xf32> to vector<4x1xf32>
    %25 = vector.shape_cast %19 : vector<4x1xf32> to vector<1x4x1xf32>
    tpu.vector_store %arg3[%c0_12, %c0_13, %c0_14], %25 {strides = array<i32>} : memref<1x4x1xf32, #tpu.memory_space<vmem>>, vector<1x4x1xf32>,
    return
  }
  func.func @transform_0(%arg0: i32) -> (i32, i32, i32) {
    %c0_i32 = arith.constant 0 : i32
    %c0_i32_0 = arith.constant 0 : i32
    %c0_i32_1 = arith.constant 0 : i32
    return %arg0, %c0_i32, %c0_i32_0 : i32, i32, i32
  }
  func.func @transform_1(%arg0: i32) -> (i32, i32, i32) {
    %c0_i32 = arith.constant 0 : i32
    %c0_i32_0 = arith.constant 0 : i32
    %c0_i32_1 = arith.constant 0 : i32
    return %arg0, %c0_i32, %c0_i32_0 : i32, i32, i32
  }
  func.func @transform_2(%arg0: i32) -> (i32, i32, i32) {
    %c0_i32 = arith.constant 0 : i32
    %c0_i32_0 = arith.constant 0 : i32
    %c0_i32_1 = arith.constant 0 : i32
    return %arg0, %c0_i32, %c0_i32_0 : i32, i32, i32
  }
}

</mosaic_0001>

<bundles_post_ra>
// kernel: tpu_custom_call.1
= control target key start
LH: loop header
LB: loop body
LE: loop exit
PB: predicated region body
PF: predicated region fallthrough
CT: control target
= control target key end

     0   :  { %8 = vsyncpa [#allocation3], 0  ;;  %s105_s9 = smov [#allocation2]   ;;  %s140_s0 = inlined_call_operand.hbm [shape: f32[2,4,256], index: 0, kind: input, shape index: {}]   ;;  %s141_s1 = inlined_call_operand.vmem [shape: f32[1,4,1], index: 1, kind: output, shape index: {0}]   ;;  %s142_s2 = inlined_call_operand.vmem [shape: f32[1,4,1], index: 2, kind: output, shape index: {1}]  }
   0x1   :  { %s14_s10 = sshll.u32 %s105_s9, 4  ;;  %s15_s10 = int_to_ptr.vmem [resolvable:$true] %s14_s10 }
   0x2   :  { %s91_s11 = scalar_lea.vmem %s15_s10, 256  ;;  %p96_p1 = scmp.lt.s32.totalorder %s15_s10, %s15_s10 }
   0x3   :  { %p92_p0 = scmp.ne.s32.totalorder %s15_s10, %s91_s11  ;;  %p97_p2 = scmp.lt.s32.totalorder %s91_s11, %s91_s11 }
   0x5   :  { %p98_p3 = por %p97_p2, %p96_p1 }
   0x7   :  { %p99_p4 = pnand %p98_p3, %p92_p0 }
   0x9   :  { %102 = shalt.err (!%p99_p4)
}
   0xa   :  { %s106_s12 = smov 128   ;;  %s107_s13 = smov 8  }
   0xb   :  { %20 = dma.hbm_to_vmem [thread:$0]  %s140_s0, 256, %s15_s10, [#allocation3], %s106_s12, %s106_s12, %s107_s13  }
   0xc   :  { %103 = dma.done.wait [#allocation3], 256  }
   0xd   :  { %104 = vsyncadd [#allocation3], 4294967040  ;;  %vm28_vm0 = vcmask 1043456   ;;  %v46_v0 = vld [vmem:[#allocation2 + $0x8] sm:$0xff]  ;;  %v24_v1 = vld [vmem:[#allocation2] sm:$0xff]  ;;  %vm66_vm1 = vcmask 3072  }
   0xe   :  { %v48_v2 = vcombine.high %v46_v0, %v46_v0  ;;  %v50_v3 = vsel %vm28_vm0, %v46_v0, 0.0  ;;  %v26_v4 = vcombine.high %v24_v1, %v24_v1  ;;  %v29_v5 = vsel %vm28_vm0, %v24_v1, 0.0 }
   0xf   :  { %v56_v6 = vmul.f32 %v46_v0, %v46_v0  ;;  %v35_v7 = vmul.f32 %v24_v1, %v24_v1 }
  0x10   :  { %v51_v8 = vsel %vm28_vm0, %v48_v2, 0.0  ;;  %v30_v9 = vsel %vm28_vm0, %v26_v4, 0.0 }
  0x11   :  { %v52_v10 = vadd.f32 %v51_v8, %v50_v3  ;;  %v31_v11 = vadd.f32 %v30_v9, %v29_v5  ;;  %v58_v12 = vcombine.high %v56_v6, %v56_v6  ;;  %v60_v13 = vsel %vm28_vm0, %v56_v6, 0.0 }
  0x12   :  { %v37_v14 = vcombine.high %v35_v7, %v35_v7  ;;  %v39_v15 = vsel %vm28_vm0, %v35_v7, 0.0 }
  0x13   :  { %53 = vadd.xlane.f32.xlu1 %v52_v10  ;;  %32 = vadd.xlane.f32.xlu0 %v31_v11  ;;  %v61_v16 = vsel %vm28_vm0, %v58_v12, 0.0 }
  0x14   :  { %v62_v17 = vadd.f32 %v61_v16, %v60_v13  ;;  %v40_v18 = vsel %vm28_vm0, %v37_v14, 0.0 }
  0x15   :  { %v41_v19 = vadd.f32 %v40_v18, %v39_v15 }
  0x17   :  { %63 = vadd.xlane.f32.xlu1 %v62_v17  ;;  %42 = vadd.xlane.f32.xlu0 %v41_v19 }
  0x9c   :  { %v54_v20 = vpop.xlane.xlu1 %53  ;;  %v33_v21 = vpop.xlane.xlu0 %32 }
  0x9d   :  { %v55_v22 = vadd.f32 %v54_v20, %v33_v21 }
  0x9f   :  { %67 = vst.msk [vmem:[%s141_s1] sm:$0xf] %vm66_vm1, %v55_v22 }
  0xa0   :  { %v64_v23 = vpop.xlane.xlu1 %63  ;;  %v43_v24 = vpop.xlane.xlu0 %42 }
  0xa1   :  { %v65_v25 = vadd.f32 %v64_v23, %v43_v24 }
  0xa3   :  { %68 = vst.msk [vmem:[%s142_s2] sm:$0xf] %vm66_vm1, %v65_v25 }
  0xa4   :  { %77 = vsyncpa [#allocation3], 1 }

</bundles_post_ra>
